<compile_context>
chip_gen: v7x
topology: tpu7x:2x2x1
jax: 0.10.0
libtpu: 0.0.40
codegen_flags: <defaults>
</compile_context>

<pallas_src>
from functools import partial

import jax
import jax.numpy as jnp
from jax.experimental import pallas as pl
from jax.experimental.pallas import tpu as pltpu


# ----------------------------------------------------------------------------
# tiling helpers
# ----------------------------------------------------------------------------
def _pick_tile(n, target, unit=128):
    """Largest multiple of `unit` that divides n and is <= target; else n."""
    t = (min(target, n) // unit) * unit
    while t >= unit:
        if n % t == 0:
            return t
        t -= unit
    return n  # full-extent block is always legal


def _pick_row_tile(n, target, unit=128):
    """Like _pick_tile, but prefer >= 2 row tiles so the 'parallel' row axis
    can shard across both TensorCores on v7x."""
    if n >= 2 * unit:
        target = min(target, n // 2)
    return _pick_tile(n, target, unit)


_AGG_VMEM_BUDGET = 40 * 1024 * 1024   # headroom under v7x's 64 MiB VMEM


def _agg_tiles(n, d_out, num_bases, tile_m, tile_k):
    """Pick (tm, tk) so the double-buffered footprint
       2*tm*tk*2 (A bf16) + 2*B*tk*d_out*2 (P bf16) + 2*tm*d_out*4 (out f32)
    stays under the budget (v5e/v6e could go higher; this is v7x-safe)."""
    tm_t, tk_t = tile_m, tile_k
    while True:
        tm = _pick_row_tile(n, tm_t)
        tk = _pick_tile(n, tk_t)
        fp = 2 * tm * tk * 2 + 2 * num_bases * tk * d_out * 2 + 2 * tm * d_out * 4
        if fp <= _AGG_VMEM_BUDGET or (tm_t <= 128 and tk_t <= 128):
            return tm, tk
        if tk_t >= tm_t:
            tk_t = max(128, tk_t // 2)
        else:
            tm_t = max(128, tm_t // 2)


# ----------------------------------------------------------------------------
# Kernel 1: basis projection  P_b = H @ V_b   (B matmuls, bf16)
# ----------------------------------------------------------------------------
def _basis_project_kernel(h_ref, v_ref, p_ref):
    p_ref[...] = jnp.dot(h_ref[...], v_ref[...],
                         preferred_element_type=jnp.float32).astype(p_ref.dtype)


def basis_project(h, bases, *, tile_m=1024):
    """P[b] = h @ bases[b].

    h:     (N, D_in)        bfloat16
    bases: (B, D_in, D_out) bfloat16
    returns (B, N, D_out)   bfloat16
    """
    n, d_in = h.shape
    num_bases, _, d_out = bases.shape
    tm = _pick_tile(n, tile_m)

    cost = pl.CostEstimate(
        flops=2 * num_bases * n * d_in * d_out,
        transcendentals=0,
        bytes_accessed=(n * d_in
                        + (n // tm) * num_bases * d_in * d_out
                        + num_bases * n * d_out) * 2,
    )
    return pl.pallas_call(
        _basis_project_kernel,
        out_shape=jax.ShapeDtypeStruct((num_bases, n, d_out), jnp.bfloat16),
        grid_spec=pltpu.PrefetchScalarGridSpec(
            num_scalar_prefetch=0,
            grid=(n // tm, num_bases),
            in_specs=[
                # H row tile: depends only on i -> resident across the b sweep
                pl.BlockSpec((tm, d_in), lambda i, b: (i, 0)),
                pl.BlockSpec((pl.Squeezed(), d_in, d_out),
                             lambda i, b: (b, 0, 0)),
            ],
            out_specs=pl.BlockSpec((pl.Squeezed(), tm, d_out),
                                   lambda i, b: (b, i, 0)),
        ),
        compiler_params=pltpu.CompilerParams(
            dimension_semantics=("parallel", "parallel"),
            vmem_limit_bytes=32 * 1024 * 1024,
        ),
        cost_estimate=cost,
    )(h, bases)


# ----------------------------------------------------------------------------
# Kernel 2: fused aggregation  out = act( sum_r A[r] @ (sum_b comb[r,b] P_b) )
# ----------------------------------------------------------------------------
def _rgcn_agg_kernel(comb_ref, a_ref, p_ref, o_ref, *, num_bases, apply_relu):
    k = pl.program_id(1)
    r = pl.program_id(2)
    last_k = pl.num_programs(1) - 1
    last_r = pl.num_programs(2) - 1

    # zero-init the resident f32 output block at the FIRST step of BOTH
    # reduction axes (k: neighbor tiles, r: relations).
    @pl.when(jnp.logical_and(k == 0, r == 0))
    def _():
        o_ref[...] = jnp.zeros_like(o_ref)

    # VPU: build this relation's projected tile from the k-resident basis
    # tiles,  P_r = sum_b comb[r, b] * P_b   (comb scalars live in SMEM).
    p_mix = comb_ref[r, 0] * p_ref[0].astype(jnp.float32)
    for b in range(1, num_bases):
        p_mix = p_mix + comb_ref[r, b] * p_ref[b].astype(jnp.float32)

    # MXU: (tm, tk) bf16 @ (tk, d_out) bf16 -> f32, accumulated directly in
    # the resident output block (no scratch accumulator).
    o_ref[...] += jnp.dot(a_ref[...], p_mix.astype(jnp.bfloat16),
                          preferred_element_type=jnp.float32)

    if apply_relu:
        # epilogue only once both reductions are complete.
        @pl.when(jnp.logical_and(k == last_k, r == last_r))
        def _():
            o_ref[...] = jnp.maximum(o_ref[...], 0.0)


def rgcn_aggregate(adj, p_bases, comb, *, apply_relu=True,
                   tile_m=2048, tile_k=2048):
    """out = act( sum_r adj[r] @ (sum_b comb[r, b] * p_bases[b]) ).

    adj:     (R, N, N)  bfloat16 row-normalized per-relation adjacency
    p_bases: (B, N, D)  bfloat16 per-basis projected features (H @ V_b)
    comb:    (R, B)     float32 basis-combination coefficients (-> SMEM)
    """
    num_rels, n, _ = adj.shape
    num_bases, _, d_out = p_bases.shape
    tm, tk = _agg_tiles(n, d_out, num_bases, tile_m, tile_k)

    num_row_tiles = n // tm
    cost = pl.CostEstimate(
        flops=(2 * num_rels * n * n * d_out                        # MXU dots
               + 2 * num_bases * num_rels * num_row_tiles * n * d_out),  # VPU mix
        transcendentals=0,
        bytes_accessed=(num_rels * n * n * adj.dtype.itemsize      # A stream
                        + num_row_tiles * num_bases * n * d_out
                        * p_bases.dtype.itemsize                   # P re-stream
                        + n * d_out * 4),                          # out writeback
    )
    kernel = partial(_rgcn_agg_kernel, num_bases=num_bases,
                     apply_relu=apply_relu)
    return pl.pallas_call(
        kernel,
        out_shape=jax.ShapeDtypeStruct((n, d_out), jnp.float32),
        grid_spec=pltpu.PrefetchScalarGridSpec(
            num_scalar_prefetch=1,                 # comb -> SMEM
            grid=(n // tm, n // tk, num_rels),     # r innermost
            in_specs=[
                # A[r, i-tile, k-tile] -- the dominant HBM stream (bf16).
                # TODO(synk): fp8 (v7x) / int8+scale (v5e,v6e) A quantization
                # would halve this stream again.
                pl.BlockSpec((pl.Squeezed(), tm, tk),
                             lambda i, k, r, comb: (r, i, k)),
                # P_bases[:, k-tile, :] -- index depends only on k, so this
                # block stays resident in VMEM across the whole r sweep.
                pl.BlockSpec((num_bases, tk, d_out),
                             lambda i, k, r, comb: (0, k, 0)),
            ],
            # output block depends only on i -> resident across (k, r).
            out_specs=pl.BlockSpec((tm, d_out),
                                   lambda i, k, r, comb: (i, 0)),
        ),
        compiler_params=pltpu.CompilerParams(
            # row tiles shard across TensorCores (v7x has 2); (k, r) reduce.
            dimension_semantics=("parallel", "arbitrary", "arbitrary"),
            vmem_limit_bytes=48 * 1024 * 1024,
        ),
        cost_estimate=cost,
    )(comb, adj, p_bases)


# ----------------------------------------------------------------------------
# BaseRGCN (concrete JAX version of the abstract torch module)
# ----------------------------------------------------------------------------
class BaseRGCN:
    def __init__(self, num_nodes, h_dim, out_dim, num_rels, num_bases=-1,
                 num_hidden_layers=1, dropout=0.0, key=None):
        self.num_nodes = num_nodes
        self.h_dim = h_dim
        self.out_dim = out_dim            # accepted but unused (as in base)
        self.num_rels = num_rels
        self.num_bases = num_bases if num_bases > 0 else num_rels
        self.num_hidden_layers = num_hidden_layers
        self.dropout = dropout
        # TODO(synk): dropout > 0 (training-mode bernoulli mask) not implemented.
        self.key = key if key is not None else jax.random.PRNGKey(0)
        self.build_model()

    def build_model(self):
        # base class: input / output layers are None; only hidden layers.
        self.layers = []
        k = self.key
        for _ in range(self.num_hidden_layers):
            k, kb, kc = jax.random.split(k, 3)
            # basis decomposition: V (B, D, D) stored bf16, comb (R, B) f32.
            bases = (jax.random.normal(
                kb, (self.num_bases, self.h_dim, self.h_dim),
                dtype=jnp.float32)
                * (1.0 / jnp.sqrt(jnp.float32(self.h_dim))))
            comb = jax.random.normal(kc, (self.num_rels, self.num_bases),
                                     dtype=jnp.float32)
            self.layers.append((bases.astype(jnp.bfloat16), comb))

    @staticmethod
    def prepare_adjacency(adj):
        """Cast the row-normalized adjacency to bf16 ONCE (dataset prep), so
        the per-forward pipeline never pays the f32->bf16 HBM pass."""
        return adj.astype(jnp.bfloat16)

    def forward(self, adj, features, *, tile_m=2048, tile_k=2048):
        # mirrors: g.ndata['h'] = features; for layer in layers: layer(g); pop('h')
        if adj.dtype != jnp.bfloat16:
            adj = self.prepare_adjacency(adj)   # normally pre-materialized
        h = features
        for bases, comb in self.layers:
            # P_b = H @ V_b           (B matmuls, bf16; Pallas)
            p_bases = basis_project(h.astype(jnp.bfloat16), bases)
            # h = ReLU( sum_r A_r @ (sum_b comb[r,b] P_b) )
            # comb mix fused into the streamed aggregation kernel; no (R,N,D)
            # intermediate ever touches HBM.
            h = rgcn_aggregate(adj, p_bases, comb, apply_relu=True,
                               tile_m=tile_m, tile_k=tile_k)
        return h


# ----------------------------------------------------------------------------
# main
# ----------------------------------------------------------------------------
if __name__ == "__main__":
    # TODO(synk): real graphs are sparse; a CSR/row-block gather formulation
    # (scalar-prefetch-driven) would avoid streaming dense (R, N, N).
    num_nodes = 512
    h_dim = 128          # multiple of 128 -> lane-dense loads/stores
    out_dim = 128
    num_rels = 4
    num_bases = 2
    num_hidden_layers = 2

    key = jax.random.PRNGKey(0)
    k_feat, k_adj, k_params = jax.random.split(key, 3)

    # deterministic node features (N, h_dim)
    features = jax.random.normal(k_feat, (num_nodes, h_dim), dtype=jnp.float32)

    # deterministic random per-relation graph, row-normalized (in-degree norm)
    raw = jax.random.bernoulli(k_adj, 0.05, (num_rels, num_nodes, num_nodes))
    adj = raw.astype(jnp.float32)
    deg = jnp.sum(adj, axis=-1, keepdims=True)
    adj = adj / jnp.maximum(deg, 1.0)

    model = BaseRGCN(num_nodes, h_dim, out_dim, num_rels,
                     num_bases=num_bases,
                     num_hidden_layers=num_hidden_layers,
                     key=k_params)

    # adjacency cast to bf16 ONCE, outside forward (hoisted per review).
    adj_bf16 = BaseRGCN.prepare_adjacency(adj)

    out = model.forward(adj_bf16, features)
    out = jax.block_until_ready(out)
    assert out.shape == (num_nodes, h_dim)

    # reference in plain JAX (same math, mirroring the kernel's quantization)
    adj_q = adj_bf16.astype(jnp.float32)
    h_ref = features
    for bases, comb in model.layers:
        h_in = h_ref.astype(jnp.bfloat16).astype(jnp.float32)
        v = bases.astype(jnp.float32)
        pb = jnp.einsum("nd,bdo->bno", h_in, v,
                        precision=jax.lax.Precision.HIGHEST)
        pb_q = pb.astype(jnp.bfloat16).astype(jnp.float32)    # bf16 P_bases
        pr = jnp.einsum("rb,bno->rno", comb, pb_q)            # f32 comb mix
        pr_q = pr.astype(jnp.bfloat16).astype(jnp.float32)    # bf16 MXU input
        h_ref = jnp.maximum(
            jnp.einsum("rnm,rmo->no", adj_q, pr_q,
                       precision=jax.lax.Precision.HIGHEST),
            0.0)

    max_err = float(jnp.max(jnp.abs(out - h_ref)))
    assert jnp.allclose(out, h_ref, atol=2e-2, rtol=2e-2), max_err

    print("KERNEL_OK")
</pallas_src>

<mosaic_0001>
module attributes {stable_mosaic.version = 11 : i64} {
  func.func @_basis_project_kernel(%arg0: i32, %arg1: i32, %arg2: memref<512x128xbf16, #tpu.memory_space<vmem>>, %arg3: memref<1x128x128xbf16, #tpu.memory_space<vmem>>, %arg4: memref<1x512x128xbf16, #tpu.memory_space<vmem>>) attributes {dimension_semantics = [#tpu.dimension_semantics<parallel>, #tpu.dimension_semantics<parallel>], iteration_bounds = array<i64: 1, 2>, scalar_prefetch = 0 : i64, scratch_operands = 0 : i64, tpu.core_type = #tpu.core_type<tc>, window_params = [{transform_indices = @transform_0, window_bounds = array<i64: 512, 128>}, {transform_indices = @transform_1, window_bounds = array<i64: 1, 128, 128>}, {transform_indices = @transform_2, window_bounds = array<i64: 1, 512, 128>}]} {
    %c0 = arith.constant 0 : index
    %c0_0 = arith.constant 0 : index
    %0 = vector.load %arg2[%c0, %c0_0] : memref<512x128xbf16, #tpu.memory_space<vmem>>, vector<512x128xbf16>
    %c0_1 = arith.constant 0 : index
    %c0_2 = arith.constant 0 : index
    %c0_3 = arith.constant 0 : index
    %1 = vector.load %arg3[%c0_1, %c0_2, %c0_3] : memref<1x128x128xbf16, #tpu.memory_space<vmem>>, vector<1x128x128xbf16>
    %2 = vector.shape_cast %1 : vector<1x128x128xbf16> to vector<128x128xbf16>
    %cst = arith.constant dense<0.000000e+00> : vector<512x128xf32>
    %3 = tpu.matmul %0, %2, %cst {dimension_numbers = #tpu.dot_dimension_numbers<[1], [0], [0], [1], [0, 0, 1, 1], [], []>} : vector<512x128xbf16>, vector<128x128xbf16>, vector<512x128xf32> -> vector<512x128xf32>
    %4 = arith.truncf %3 : vector<512x128xf32> to vector<512x128xbf16>
    %c0_4 = arith.constant 0 : index
    %c0_5 = arith.constant 0 : index
    %c0_6 = arith.constant 0 : index
    %5 = vector.load %arg4[%c0_4, %c0_5, %c0_6] : memref<1x512x128xbf16, #tpu.memory_space<vmem>>, vector<1x512x128xbf16>
    %6 = vector.shape_cast %5 : vector<1x512x128xbf16> to vector<512x128xbf16>
    %7 = vector.shape_cast %4 : vector<512x128xbf16> to vector<1x512x128xbf16>
    tpu.vector_store %arg4[%c0_4, %c0_5, %c0_6], %7 {strides = array<i32>} : memref<1x512x128xbf16, #tpu.memory_space<vmem>>, vector<1x512x128xbf16>,
    return
  }
  func.func @transform_0(%arg0: i32, %arg1: i32) -> (i32, i32) {
    %c0_i32 = arith.constant 0 : i32
    %c0_i32_0 = arith.constant 0 : i32
    return %arg0, %c0_i32 : i32, i32
  }
  func.func @transform_1(%arg0: i32, %arg1: i32) -> (i32, i32, i32) {
    %c0_i32 = arith.constant 0 : i32
    %c0_i32_0 = arith.constant 0 : i32
    %c0_i32_1 = arith.constant 0 : i32
    return %arg1, %c0_i32, %c0_i32_0 : i32, i32, i32
  }
  func.func @transform_2(%arg0: i32, %arg1: i32) -> (i32, i32, i32) {
    %c0_i32 = arith.constant 0 : i32
    %c0_i32_0 = arith.constant 0 : i32
    return %arg1, %arg0, %c0_i32 : i32, i32, i32
  }
}

</mosaic_0001>

<bundles_post_ra>
// kernel: tpu_custom_call.1
= control target key start
LH: loop header
LB: loop body
LE: loop exit
PB: predicated region body
PF: predicated region fallthrough
CT: control target
= control target key end

     0   :  { %7 = vsyncpa [#allocation3], 0  ;;  %s2315_s0 = inlined_call_operand.hbm [shape: bf16[512,128], index: 0, kind: input, shape index: {}]   ;;  %s2316_s1 = inlined_call_operand.hbm [shape: bf16[2,128,128], index: 1, kind: input, shape index: {}]   ;;  %s2317_s2 = inlined_call_operand.hbm [shape: bf16[2,512,128], index: 2, kind: output, shape index: {}]  }
   0x1   :  { %8 = vsyncpa [#allocation6], 0 }
   0x2   :  { %10 = vsyncpa [#allocation6 + $0x1], 0 }
   0x3   :  { %11 = vsyncpa [#allocation4], 0 }
   0x4   :  { %13 = vsyncpa [#allocation4 + $0x1], 0  ;;  %s2044_s9 = smov 0   ;;  %s2046_s10 = smov 0  }
   0x5   :  { %s2048_s11 = smov 0   ;;  %s2050_s12 = smov 0  }
   0x6   :  { %s2052_s13 = smov 0   ;;  %s2054_s14 = smov 0  }
   0x7 LB: > { %s1245_s15 = sadd.s32 4294967295, %s2020_s14   ;;  %s1246_s16 = sadd.s32 4294967294, %s2020_s14   ;;  %s2020_s14 = sphi %s2054_s14, %s19_s14   ;;  %s2016_s13 = sphi %s2052_s13, %s2341_s13   ;;  %s2012_s12 = sphi %s2050_s12, %s2340_s12   ;;  %s2008_s11 = sphi %s2048_s11, %s2339_s11   ;;  %s2004_s10 = sphi %s2046_s10, %s2338_s10   ;;  %s2000_s9 = sphi %s2044_s9, %s2337_s9  }
   0x8   : > { %p77_p0 = scmp.ne.s32.totalorder %s2004_s10, %s2000_s9  ;;  %p2078_p1 = scmp.eq.s32.totalorder %s1245_s15, 0 }
   0x9   : > { %p2082_p2 = scmp.eq.s32.totalorder %s1245_s15, 1  ;;  %p109_p3 = scmp.eq.s32.totalorder %s1246_s16, 1 }
   0xa   : > { %s2322_s17 = scalar_select %p2078_p1, 1, 0 }
   0xb   : > { %s2323_s18 = scalar_select %p2082_p2, 1, 0 }
   0xc   : > { %p2088_p4 = por %p2078_p1, %p77_p0  ;;  %p1247_p5 = scmp.ge.s32.totalorder %s2020_s14, 1 }
   0xd   : > { %p2093_p6 = por %p109_p3, %p77_p0  ;;  %p116_p7 = scmp.lt.s32.totalorder %s2020_s14, 3 }
   0xe   : > { %s2324_s19 = scalar_select %p2088_p4, 1, 0 }
   0xf   : > { %s2325_s20 = scalar_select %p2093_p6, 1, 0 }
  0x10   : > { %p2098_p8 = pnand %p1247_p5, %p116_p7  ;;  %s2022_s22 = smov [#allocation2]  }
  0x11   : > { %s131_s23 = sshll.u32 %s2022_s22, 4  ;;  %s28_s25 = sadd.s32 1, %s2016_s13  ;;  %s132_s23 = int_to_ptr.vmem [resolvable:$true] %s131_s23 }
  0x12   : > { %s2326_s21 = scalar_select %p2098_p8, 1, 0 }
  0x13   : > { %p1767_p9 = pneg %p2098_p8  ;;  %s1876_s28 = scalar_lea.hbm %s2315_s0, 4096 }
  0x14   : > { %p1877_p12 = scmp.ne.s32.totalorder %s2315_s0, %s1876_s28  ;;  %p1883_p5 = scmp.lt.u32.totalorder %s1876_s28, %s2315_s0 }
  0x15   : > { %p2107_p11 = pnand %p1767_p9, %p2078_p1 }
  0x17   : > { %p1878_p13 = pneg %p2107_p11 }
  0x19   : > { %p1879_p0 = pnand %p1878_p13, %p1877_p12 }
  0x1b   : > { %p1880_p3 = pneg %p1879_p0 }
  0x1d   : > { %p1885_p7 = pnand %p1883_p5, %p1880_p3 }
  0x1f   : > { %1888 = shalt.err (!%p1885_p7)
}
  0x20   : > { %s1889_s5 = scalar_lea.vmem %s132_s23, 4096  ;;  %p1897_p4 = scmp.lt.s32.totalorder %s132_s23, %s132_s23 }
  0x21   : > { %p1890_p9 = scmp.ne.s32.totalorder %s132_s23, %s1889_s5  ;;  %p1898_p1 = scmp.lt.s32.totalorder %s1889_s5, %s1889_s5 }
  0x23   : > { %p1892_p10 = pnand %p1890_p9, %p1878_p13  ;;  %p1899_p8 = por %p1898_p1, %p1897_p4 }
  0x25   : > { %p1893_p6 = pneg %p1892_p10 }
  0x27   : > { %p1900_p2 = pnand %p1899_p8, %p1893_p6 }
  0x29   : > { %1903 = shalt.err (!%p1900_p2)
}
  0x2a   : > { %s2023_s6 = smov 64   ;;  %s2024_s7 = smov 4  }
  0x2b   : > { %1770 = dma.hbm_to_vmem [thread:$0]  (!%p2107_p11), %s2315_s0, 4096, %s132_s23, [#allocation3], %s2023_s6, %s2023_s6, %s2024_s7  }
  0x2c   : > { %p29_p1 = scmp.ge.s32.totalorder %s28_s25, 2  ;;  %s64_s16 = sadd.s32 1, %s2008_s11 }
  0x2d   : > { %p71_p2 = scmp.ne.s32.totalorder %s2008_s11, %s2004_s10  ;;  %p72_p4 = scmp.eq.s32.totalorder %s2020_s14, 0 }
  0x2e   : > { %s2343_s25 = smov (%p29_p1, %s28_s25), 0  ;;  %p2329_p8 = scmp.ne.s32.totalorder %s2323_s18, 0 }
  0x2f   : > { %p2137_p6 = por %p72_p4, %p71_p2  ;;  %s61_s26 = ssub.s32 %s2016_s13, %s2343_s25 }
  0x30   : > { %p2143_p10 = por %p2329_p8, %p71_p2  ;;  %p1780_p12 = scmp.lt.s32.totalorder %s2020_s14, 2 }
  0x31   : > { %p62_p11 = scmp.eq.s32.totalorder %s61_s26, 0  ;;  %s145_s23 = sand.u32 1, %s2008_s11  }
  0x32   : > { %s1250_s27 = sshll.u32 %s145_s23, 6  ;;  %s1366_s29 = sshll.u32 %s2016_s13, 10 }
  0x33   : > { %s2152_s28 = scalar_select %p62_p11, %s2008_s11, %s64_s16  }
  0x34   : > { %s2158_s4 = scalar_lea.hbm %s2316_s1, %s1366_s29  ;;  %s149_s18 = scalar_lea.vmem [#allocation5], %s1250_s27 }
  0x35   : > { %s156_s5 = sshll.u32 %s149_s18, 4  ;;  %p2164_p13 = pnand %p1780_p12, %p2137_p6  ;;  %s2160_s5 = int_to_ptr.vmem [resolvable:$true] %s156_s5 }
  0x36   : > { %s2168_s15 = scalar_lea.sflag [#allocation6], %s145_s23  ;;  %s1904_s16 = scalar_lea.hbm %s2158_s4, 1024 }
  0x37   : > { %p1905_p0 = scmp.ne.s32.totalorder %s2158_s4, %s1904_s16  ;;  %p1906_p3 = pneg %p2164_p13 }
  0x38   : > { %s1909_s22 = scalar_lea.hbm %s2316_s1, 2048  ;;  %p1910_p9 = scmp.lt.u32.totalorder %s2158_s4, %s2316_s1 }
  0x39   : > { %p1907_p5 = pnand %p1906_p3, %p1905_p0  ;;  %p1911_p1 = scmp.lt.u32.totalorder %s1909_s22, %s1904_s16 }
  0x3a   : > { %p1913_p4 = scmp.lt.u32.totalorder %s1904_s16, %s2158_s4 }
  0x3b   : > { %p1908_p7 = pneg %p1907_p5  ;;  %p1912_p2 = por %p1911_p1, %p1910_p9 }
  0x3d   : > { %p1914_p6 = por %p1913_p4, %p1912_p2 }
  0x3f   : > { %p1915_p8 = pnand %p1914_p6, %p1908_p7 }
  0x41   : > { %1918 = shalt.err (!%p1915_p8)
}
  0x42   : > { %s1919_s23 = scalar_lea.vmem %s2160_s5, 1024  ;;  %s2025_s3 = smov [#allocation5]  }
  0x43   : > { %p1920_p12 = scmp.ne.s32.totalorder %s2160_s5, %s1919_s23  ;;  %s1924_s18 = sshll.u32 %s2025_s3, 4  ;;  %s1925_s18 = int_to_ptr.vmem [resolvable:$false] %s1924_s18 }
  0x44   : > { %s1926_s26 = scalar_lea.vmem %s1925_s18, 2048  ;;  %p1927_p5 = scmp.lt.s32.totalorder %s2160_s5, %s1925_s18 }
  0x45   : > { %p1922_p11 = pnand %p1920_p12, %p1906_p3  ;;  %p1928_p9 = scmp.lt.s32.totalorder %s1926_s26, %s1919_s23 }
  0x47   : > { %p1923_p0 = pneg %p1922_p11  ;;  %p1929_p1 = por %p1928_p9, %p1927_p5 }
  0x49   : > { %p1930_p2 = pnand %p1929_p1, %p1923_p0 }
  0x4b   : > { %1933 = shalt.err (!%p1930_p2)
}
  0x4c   : > { %1774 = dma.hbm_to_vmem [thread:$0]  (!%p2164_p13), %s2158_s4, 1024, %s2160_s5, %s2168_s15, %s2023_s6, %s2023_s6, %s2024_s7  }
  0x4d   : > { %p2332_p3 = scmp.ne.s32.totalorder %s2326_s21, 0 }
  0x4e   : > { %p2333_p7 = scmp.ne.s32.totalorder (!%p2332_p3), %s2322_s17, 0 }
  0x4f   : > { %168 = sbr.rel (%p2332_p3) target bundleno = 412 (0x19c), region = 28 }
  0x56   : > { %1987 = dma.done.wait (%p2333_p7), [#allocation3], 4096  }
  0x57   : > { %1989 = vsyncadd (%p2333_p7), [#allocation3], 4294963200  ;;  %s2206_s16 = sand.u32 1, %s2004_s10   ;;  %p2334_p13 = scmp.ne.s32.totalorder %s2324_s19, 0 }
  0x58   : > { %s1255_s8 = sshll.u32 %s2206_s16, 6  ;;  %s175_s27 = scalar_lea.sflag [#allocation6], %s2206_s16 }
  0x59   : > { %s2210_s22 = scalar_lea.vmem [#allocation5], %s1255_s8 }
  0x5a   : > { %1991 = dma.done.wait (%p2334_p13), %s175_s27, 1024  }
  0x5b   : > { %1993 = vsyncadd (%p2334_p13), %s175_s27, 4294966272  ;;  %v1836_v0 = vld [vmem:[%s2210_s22] sm:$0xff]   ;;  %v1837_v1 = vld [vmem:[%s2210_s22 + $0x8] sm:$0xff]   ;;  %s1256_s17 = sshll.u32 %s2206_s16, 8  ;;  %s1431_s21 = sshll.u32 %s2012_s12, 12 }
  0x5c   : > { %1663 = vmatprep.subr.bf16.mxu0 %v1836_v0  ;;  %1743 = vmatprep.subr.bf16.mxu1 %v1836_v0  ;;  %v1838_v2 = vld [vmem:[%s2210_s22 + $0x10] sm:$0xff]   ;;  %v1839_v3 = vld [vmem:[%s2210_s22 + $0x18] sm:$0xff]   ;;  %v1844_v4 = vld [vmem:[#allocation2] sm:$0xff]   ;;  %s2225_s19 = scalar_lea.vmem [#allocation7], %s1256_s17  ;;  %s2260_s5 = scalar_lea.hbm %s2317_s2, %s1431_s21 }
  0x5d   : > { %1664 = vmatpush3.bf16.msra.mxu0 %v1836_v0  ;;  %1751 = vmatpush3.bf16.msra.mxu1 %v1836_v0  ;;  %v1845_v5 = vld [vmem:[#allocation2 + $0x80] sm:$0xff]   ;;  %v1841_v7 = vld [vmem:[%s2210_s22 + $0x28] sm:$0xff]   ;;  %v1842_v8 = vld [vmem:[%s2210_s22 + $0x30] sm:$0xff]   ;;  %s1147_s6 = sshll.u32 %s2225_s19, 4  ;;  %s1132_s12 = scalar_lea.sflag [#allocation4], %s2206_s16  ;;  %s2262_s6 = int_to_ptr.vmem [resolvable:$true] %s1147_s6 }
  0x5e   : > { %1665 = vmatprep.subr.bf16.mxu0 %v1837_v1  ;;  %1744 = vmatprep.subr.bf16.mxu1 %v1837_v1  ;;  %v1840_v6 = vld [vmem:[%s2210_s22 + $0x20] sm:$0xff]   ;;  %v1843_v9 = vld [vmem:[%s2210_s22 + $0x38] sm:$0xff]   ;;  %v1846_v10 = vld [vmem:[#allocation2 + $0x8] sm:$0xff]   ;;  %s1934_s15 = scalar_lea.vmem %s2262_s6, 4096  ;;  %s2026_s29 = smov [#allocation7]  }
  0x5f   : > { %1679 = vmatprep.mubr.bf16.mxu0 %v1844_v4  ;;  %1711 = vmatprep.mubr.bf16.mxu1 %v1845_v5  ;;  %v1847_v11 = vld [vmem:[#allocation2 + $0x88] sm:$0xff]   ;;  %v1848_v12 = vld [vmem:[#allocation2 + $0x10] sm:$0xff]   ;;  %v1850_v14 = vld [vmem:[#allocation2 + $0x18] sm:$0xff]   ;;  %p1935_p4 = scmp.ne.s32.totalorder %s2262_s6, %s1934_s15  ;;  %s1938_s30 = sshll.u32 %s2026_s29, 4  ;;  %s1939_s30 = int_to_ptr.vmem [resolvable:$false] %s1938_s30 }
  0x60   : > { %v1849_v13 = vld [vmem:[#allocation2 + $0x90] sm:$0xff]   ;;  %v1851_v15 = vld [vmem:[#allocation2 + $0x98] sm:$0xff]   ;;  %v1852_v16 = vld [vmem:[#allocation2 + $0x20] sm:$0xff]   ;;  %s1940_s23 = scalar_lea.vmem %s1939_s30, 8192  ;;  %p1941_p12 = scmp.lt.s32.totalorder %s2262_s6, %s1939_s30 }
  0x61   : > { %1666 = vmatpush3.bf16.msra.mxu0 %v1837_v1  ;;  %1752 = vmatpush3.bf16.msra.mxu1 %v1837_v1  ;;  %v1853_v17 = vld [vmem:[#allocation2 + $0xa0] sm:$0xff]   ;;  %v1854_v18 = vld [vmem:[#allocation2 + $0x28] sm:$0xff]   ;;  %v1856_v20 = vld [vmem:[#allocation2 + $0x30] sm:$0xff]   ;;  %p1936_p6 = pnand %p1935_p4, %p2143_p10  ;;  %p1942_p11 = scmp.lt.s32.totalorder %s1940_s23, %s1934_s15 }
  0x62   : > { %1667 = vmatprep.subr.bf16.mxu0 %v1838_v2  ;;  %1745 = vmatprep.subr.bf16.mxu1 %v1838_v2  ;;  %v1855_v19 = vld [vmem:[#allocation2 + $0xa8] sm:$0xff]   ;;  %v1857_v21 = vld [vmem:[#allocation2 + $0xb0] sm:$0xff]   ;;  %v1858_v22 = vld [vmem:[#allocation2 + $0x38] sm:$0xff]  }
  0x63   : > { %v1859_v23 = vld [vmem:[#allocation2 + $0xb8] sm:$0xff]   ;;  %v1860_v24 = vld [vmem:[#allocation2 + $0x40] sm:$0xff]   ;;  %v1862_v26 = vld [vmem:[#allocation2 + $0x48] sm:$0xff]   ;;  %p1937_p8 = pneg %p1936_p6  ;;  %p1943_p0 = por %p1942_p11, %p1941_p12 }
  0x64   : > { %v1861_v25 = vld [vmem:[#allocation2 + $0xc0] sm:$0xff]   ;;  %v1863_v27 = vld [vmem:[#allocation2 + $0xc8] sm:$0xff]   ;;  %v1864_v28 = vld [vmem:[#allocation2 + $0x50] sm:$0xff]  }
  0x65   : > { %1668 = vmatpush3.bf16.msra.mxu0 %v1838_v2  ;;  %1753 = vmatpush3.bf16.msra.mxu1 %v1838_v2  ;;  %v1865_v29 = vld [vmem:[#allocation2 + $0xd0] sm:$0xff]   ;;  %v1866_v30 = vld [vmem:[#allocation2 + $0x58] sm:$0xff]   ;;  %v1868_v32 = vld [vmem:[#allocation2 + $0x60] sm:$0xff]   ;;  %p1944_p5 = pnand %p1943_p0, %p1937_p8 }
  0x66   : > { %1669 = vmatprep.subr.bf16.mxu0 %v1839_v3  ;;  %1746 = vmatprep.subr.bf16.mxu1 %v1839_v3  ;;  %v1867_v31 = vld [vmem:[#allocation2 + $0xd8] sm:$0xff]   ;;  %v1869_v33 = vld [vmem:[#allocation2 + $0xe0] sm:$0xff]   ;;  %v1870_v34 = vld [vmem:[#allocation2 + $0x68] sm:$0xff]  }
  0x67   : > { %v1871_v35 = vld [vmem:[#allocation2 + $0xe8] sm:$0xff]   ;;  %v1872_v36 = vld [vmem:[#allocation2 + $0x70] sm:$0xff]   ;;  %v1874_v38 = vld [vmem:[#allocation2 + $0x78] sm:$0xff]  }
  0x68   : > { %v1873_v37 = vld [vmem:[#allocation2 + $0xf0] sm:$0xff]   ;;  %v1875_v39 = vld [vmem:[#allocation2 + $0xf8] sm:$0xff]  }
  0x69   : > { %1670 = vmatpush3.bf16.msra.mxu0 %v1839_v3  ;;  %1754 = vmatpush3.bf16.msra.mxu1 %v1839_v3 }
  0x6a   : > { %1671 = vmatprep.subr.bf16.mxu0 %v1840_v6  ;;  %1747 = vmatprep.subr.bf16.mxu1 %v1840_v6 }
  0x6d   : > { %1672 = vmatpush3.bf16.msra.mxu0 %v1840_v6  ;;  %1755 = vmatpush3.bf16.msra.mxu1 %v1840_v6 }
  0x6e   : > { %1673 = vmatprep.subr.bf16.mxu0 %v1841_v7  ;;  %1748 = vmatprep.subr.bf16.mxu1 %v1841_v7 }
  0x71   : > { %1674 = vmatpush3.bf16.msra.mxu0 %v1841_v7  ;;  %1756 = vmatpush3.bf16.msra.mxu1 %v1841_v7 }
  0x72   : > { %1675 = vmatprep.subr.bf16.mxu0 %v1842_v8  ;;  %1749 = vmatprep.subr.bf16.mxu1 %v1842_v8 }
  0x75   : > { %1676 = vmatpush3.bf16.msra.mxu0 %v1842_v8  ;;  %1757 = vmatpush3.bf16.msra.mxu1 %v1842_v8 }
  0x76   : > { %1677 = vmatprep.subr.bf16.mxu0 %v1843_v9  ;;  %1750 = vmatprep.subr.bf16.mxu1 %v1843_v9 }
  0x79   : > { %1678 = vmatpush3.bf16.msra.mxu0 %v1843_v9  ;;  %1758 = vmatpush3.bf16.msra.mxu1 %v1843_v9 }
  0x7c   : > { %1680 = vmatmul.mubr.bf16.vlgmr.msra.gmra.mrb[0].mxu0 %v1846_v10  ;;  %1712 = vmatmul.mubr.bf16.vlgmr.msra.gmra.mrb[0].mxu1 %v1847_v11 }
  0x7d   : > { %1683 = vmatprep.mubr.bf16.mxu0 %v1848_v12  ;;  %1715 = vmatprep.mubr.bf16.mxu1 %v1849_v13 }
  0x84   : > { %1684 = vmatmul.mubr.bf16.gmra.mrb[4].mxu0 %v1850_v14  ;;  %1716 = vmatmul.mubr.bf16.gmra.mrb[4].mxu1 %v1851_v15 }
  0x85   : > { %1687 = vmatprep.mubr.bf16.mxu0 %v1852_v16  ;;  %1719 = vmatprep.mubr.bf16.mxu1 %v1853_v17 }
  0x8c   : > { %1688 = vmatmul.mubr.bf16.gmra.mrb[8].mxu0 %v1854_v18  ;;  %1720 = vmatmul.mubr.bf16.gmra.mrb[8].mxu1 %v1855_v19 }
  0x8d   : > { %1691 = vmatprep.mubr.bf16.mxu0 %v1856_v20  ;;  %1723 = vmatprep.mubr.bf16.mxu1 %v1857_v21 }
  0x94   : > { %1692 = vmatmul.mubr.bf16.gmra.mrb[12].mxu0 %v1858_v22  ;;  %1724 = vmatmul.mubr.bf16.gmra.mrb[12].mxu1 %v1859_v23 }
  0x95   : > { %1695 = vmatprep.mubr.bf16.mxu0 %v1860_v24  ;;  %1727 = vmatprep.mubr.bf16.mxu1 %v1861_v25 }
  0x9c   : > { %1696 = vmatmul.mubr.bf16.gmra.mrb[16].mxu0 %v1862_v26  ;;  %1728 = vmatmul.mubr.bf16.gmra.mrb[16].mxu1 %v1863_v27 }
  0x9d   : > { %1699 = vmatprep.mubr.bf16.mxu0 %v1864_v28  ;;  %1731 = vmatprep.mubr.bf16.mxu1 %v1865_v29 }
  0xa4   : > { %1700 = vmatmul.mubr.bf16.gmra.mrb[20].mxu0 %v1866_v30  ;;  %1732 = vmatmul.mubr.bf16.gmra.mrb[20].mxu1 %v1867_v31 }
  0xa5   : > { %1703 = vmatprep.mubr.bf16.mxu0 %v1868_v32  ;;  %1735 = vmatprep.mubr.bf16.mxu1 %v1869_v33 }
  0xac   : > { %1704 = vmatmul.mubr.bf16.gmra.mrb[24].mxu0 %v1870_v34  ;;  %1736 = vmatmul.mubr.bf16.gmra.mrb[24].mxu1 %v1871_v35 }
  0xad   : > { %1707 = vmatprep.mubr.bf16.mxu0 %v1872_v36  ;;  %1739 = vmatprep.mubr.bf16.mxu1 %v1873_v37 }
  0xb4   : > { %1708 = vmatmul.mubr.bf16.gmra.mrb[28].mxu0 %v1874_v38  ;;  %1740 = vmatmul.mubr.bf16.gmra.mrb[28].mxu1 %v1875_v39 }
 0x14f   : > { %v1681_v40 = vpop.f32.mrb[0].mxu0  ;;  %v1713_v41 = vpop.f32.mrb[0].mxu1 }
 0x150   : > { %v556_v42 = vpop.f32.mrb[1].mxu0  ;;  %v684_v43 = vpop.f32.mrb[1].mxu1 }
 0x151   : > { %v1682_v44 = vpop.f32.mrb[2].mxu0  ;;  %v1714_v45 = vpop.f32.mrb[2].mxu1 }
 0x152   : > { %v1440_v46 = vpack.c.bf16 %v1682_v44, %v1681_v40  ;;  %v1520_v47 = vpack.c.bf16 %v1714_v45, %v1713_v41  ;;  %v559_v48 = vpop.f32.mrb[3].mxu0  ;;  %v687_v49 = vpop.f32.mrb[3].mxu1 }
 0x153   : > { %v1435_v50 = vpack.c.bf16 %v559_v48, %v556_v42  ;;  %v1515_v51 = vpack.c.bf16 %v687_v49, %v684_v43 }
 0x154   : > { %1592 = vst [vmem:[%s2225_s19 + $0x8] sm:$0xff] %v1440_v46   ;;  %1608 = vst [vmem:[%s2225_s19 + $0x88] sm:$0xff] %v1520_v47  }
 0x155   : > { %1436 = vst [vmem:[%s2225_s19] sm:$0xff] %v1435_v50   ;;  %1607 = vst [vmem:[%s2225_s19 + $0x80] sm:$0xff] %v1515_v51  }
 0x157   : > { %v1685_v52 = vpop.f32.mrb[4].mxu0  ;;  %v1717_v53 = vpop.f32.mrb[4].mxu1 }
 0x158   : > { %v572_v54 = vpop.f32.mrb[5].mxu0  ;;  %v700_v55 = vpop.f32.mrb[5].mxu1 }
 0x159   : > { %v1686_v56 = vpop.f32.mrb[6].mxu0  ;;  %v1718_v57 = vpop.f32.mrb[6].mxu1 }
 0x15a   : > { %v1450_v58 = vpack.c.bf16 %v1686_v56, %v1685_v52  ;;  %v1530_v59 = vpack.c.bf16 %v1718_v57, %v1717_v53  ;;  %v575_v60 = vpop.f32.mrb[7].mxu0  ;;  %v703_v61 = vpop.f32.mrb[7].mxu1 }
 0x15b   : > { %v1445_v62 = vpack.c.bf16 %v575_v60, %v572_v54  ;;  %v1525_v63 = vpack.c.bf16 %v703_v61, %v700_v55 }
 0x15c   : > { %1594 = vst [vmem:[%s2225_s19 + $0x18] sm:$0xff] %v1450_v58   ;;  %1610 = vst [vmem:[%s2225_s19 + $0x98] sm:$0xff] %v1530_v59  }
 0x15d   : > { %1593 = vst [vmem:[%s2225_s19 + $0x10] sm:$0xff] %v1445_v62   ;;  %1609 = vst [vmem:[%s2225_s19 + $0x90] sm:$0xff] %v1525_v63  }
 0x15f   : > { %v1689_v0 = vpop.f32.mrb[8].mxu0  ;;  %v1721_v1 = vpop.f32.mrb[8].mxu1 }
 0x160   : > { %v588_v2 = vpop.f32.mrb[9].mxu0  ;;  %v716_v3 = vpop.f32.mrb[9].mxu1 }
 0x161   : > { %v1690_v4 = vpop.f32.mrb[10].mxu0  ;;  %v1722_v5 = vpop.f32.mrb[10].mxu1 }
 0x162   : > { %v1460_v6 = vpack.c.bf16 %v1690_v4, %v1689_v0  ;;  %v1540_v7 = vpack.c.bf16 %v1722_v5, %v1721_v1  ;;  %v591_v8 = vpop.f32.mrb[11].mxu0  ;;  %v719_v9 = vpop.f32.mrb[11].mxu1 }
 0x163   : > { %v1455_v10 = vpack.c.bf16 %v591_v8, %v588_v2  ;;  %v1535_v11 = vpack.c.bf16 %v719_v9, %v716_v3 }
 0x164   : > { %1596 = vst [vmem:[%s2225_s19 + $0x28] sm:$0xff] %v1460_v6   ;;  %1612 = vst [vmem:[%s2225_s19 + $0xa8] sm:$0xff] %v1540_v7  }
 0x165   : > { %1595 = vst [vmem:[%s2225_s19 + $0x20] sm:$0xff] %v1455_v10   ;;  %1611 = vst [vmem:[%s2225_s19 + $0xa0] sm:$0xff] %v1535_v11  }
 0x167   : > { %v1693_v12 = vpop.f32.mrb[12].mxu0  ;;  %v1725_v13 = vpop.f32.mrb[12].mxu1 }
 0x168   : > { %v604_v14 = vpop.f32.mrb[13].mxu0  ;;  %v732_v15 = vpop.f32.mrb[13].mxu1 }
 0x169   : > { %v1694_v16 = vpop.f32.mrb[14].mxu0  ;;  %v1726_v17 = vpop.f32.mrb[14].mxu1 }
 0x16a   : > { %v1470_v18 = vpack.c.bf16 %v1694_v16, %v1693_v12  ;;  %v1550_v19 = vpack.c.bf16 %v1726_v17, %v1725_v13  ;;  %v607_v20 = vpop.f32.mrb[15].mxu0  ;;  %v735_v21 = vpop.f32.mrb[15].mxu1 }
 0x16b   : > { %v1465_v22 = vpack.c.bf16 %v607_v20, %v604_v14  ;;  %v1545_v23 = vpack.c.bf16 %v735_v21, %v732_v15 }
 0x16c   : > { %1598 = vst [vmem:[%s2225_s19 + $0x38] sm:$0xff] %v1470_v18   ;;  %1614 = vst [vmem:[%s2225_s19 + $0xb8] sm:$0xff] %v1550_v19  }
 0x16d   : > { %1597 = vst [vmem:[%s2225_s19 + $0x30] sm:$0xff] %v1465_v22   ;;  %1613 = vst [vmem:[%s2225_s19 + $0xb0] sm:$0xff] %v1545_v23  }
 0x16f   : > { %v1697_v24 = vpop.f32.mrb[16].mxu0  ;;  %v1729_v25 = vpop.f32.mrb[16].mxu1 }
 0x170   : > { %v620_v26 = vpop.f32.mrb[17].mxu0  ;;  %v748_v27 = vpop.f32.mrb[17].mxu1 }
 0x171   : > { %v1698_v28 = vpop.f32.mrb[18].mxu0  ;;  %v1730_v29 = vpop.f32.mrb[18].mxu1 }
 0x172   : > { %v1480_v30 = vpack.c.bf16 %v1698_v28, %v1697_v24  ;;  %v1560_v31 = vpack.c.bf16 %v1730_v29, %v1729_v25  ;;  %v623_v32 = vpop.f32.mrb[19].mxu0  ;;  %v751_v33 = vpop.f32.mrb[19].mxu1 }
 0x173   : > { %v1475_v34 = vpack.c.bf16 %v623_v32, %v620_v26  ;;  %v1555_v35 = vpack.c.bf16 %v751_v33, %v748_v27 }
 0x174   : > { %1600 = vst [vmem:[%s2225_s19 + $0x48] sm:$0xff] %v1480_v30   ;;  %1616 = vst [vmem:[%s2225_s19 + $0xc8] sm:$0xff] %v1560_v31  }
 0x175   : > { %1599 = vst [vmem:[%s2225_s19 + $0x40] sm:$0xff] %v1475_v34   ;;  %1615 = vst [vmem:[%s2225_s19 + $0xc0] sm:$0xff] %v1555_v35  }
 0x177   : > { %v1701_v36 = vpop.f32.mrb[20].mxu0  ;;  %v1733_v37 = vpop.f32.mrb[20].mxu1 }
 0x178   : > { %v636_v38 = vpop.f32.mrb[21].mxu0  ;;  %v764_v39 = vpop.f32.mrb[21].mxu1 }
 0x179   : > { %v1702_v40 = vpop.f32.mrb[22].mxu0  ;;  %v1734_v41 = vpop.f32.mrb[22].mxu1 }
 0x17a   : > { %v1490_v42 = vpack.c.bf16 %v1702_v40, %v1701_v36  ;;  %v1570_v43 = vpack.c.bf16 %v1734_v41, %v1733_v37  ;;  %v639_v44 = vpop.f32.mrb[23].mxu0  ;;  %v767_v45 = vpop.f32.mrb[23].mxu1 }
 0x17b   : > { %v1485_v46 = vpack.c.bf16 %v639_v44, %v636_v38  ;;  %v1565_v47 = vpack.c.bf16 %v767_v45, %v764_v39 }
 0x17c   : > { %1602 = vst [vmem:[%s2225_s19 + $0x58] sm:$0xff] %v1490_v42   ;;  %1618 = vst [vmem:[%s2225_s19 + $0xd8] sm:$0xff] %v1570_v43  }
 0x17d   : > { %1601 = vst [vmem:[%s2225_s19 + $0x50] sm:$0xff] %v1485_v46   ;;  %1617 = vst [vmem:[%s2225_s19 + $0xd0] sm:$0xff] %v1565_v47  }
 0x17f   : > { %v1705_v48 = vpop.f32.mrb[24].mxu0  ;;  %v1737_v49 = vpop.f32.mrb[24].mxu1 }
 0x180   : > { %v652_v50 = vpop.f32.mrb[25].mxu0  ;;  %v780_v51 = vpop.f32.mrb[25].mxu1 }
 0x181   : > { %v1706_v52 = vpop.f32.mrb[26].mxu0  ;;  %v1738_v53 = vpop.f32.mrb[26].mxu1 }
 0x182   : > { %v1500_v54 = vpack.c.bf16 %v1706_v52, %v1705_v48  ;;  %v1580_v55 = vpack.c.bf16 %v1738_v53, %v1737_v49  ;;  %v655_v56 = vpop.f32.mrb[27].mxu0  ;;  %v783_v57 = vpop.f32.mrb[27].mxu1 }
 0x183   : > { %v1495_v58 = vpack.c.bf16 %v655_v56, %v652_v50  ;;  %v1575_v59 = vpack.c.bf16 %v783_v57, %v780_v51 }
 0x184   : > { %1604 = vst [vmem:[%s2225_s19 + $0x68] sm:$0xff] %v1500_v54   ;;  %1620 = vst [vmem:[%s2225_s19 + $0xe8] sm:$0xff] %v1580_v55  }
 0x185   : > { %1603 = vst [vmem:[%s2225_s19 + $0x60] sm:$0xff] %v1495_v58   ;;  %1619 = vst [vmem:[%s2225_s19 + $0xe0] sm:$0xff] %v1575_v59  }
 0x187   : > { %v1709_v60 = vpop.f32.mrb[28].mxu0  ;;  %v1741_v61 = vpop.f32.mrb[28].mxu1 }
 0x188   : > { %v668_v62 = vpop.f32.mrb[29].mxu0  ;;  %v796_v63 = vpop.f32.mrb[29].mxu1 }
 0x189   : > { %v1710_v0 = vpop.f32.mrb[30].mxu0  ;;  %v1742_v1 = vpop.f32.mrb[30].mxu1 }
 0x18a   : > { %v1510_v2 = vpack.c.bf16 %v1710_v0, %v1709_v60  ;;  %v1590_v3 = vpack.c.bf16 %v1742_v1, %v1741_v61  ;;  %v671_v4 = vpop.f32.mrb[31].mxu0  ;;  %v799_v5 = vpop.f32.mrb[31].mxu1 }
 0x18b   : > { %v1505_v6 = vpack.c.bf16 %v671_v4, %v668_v62  ;;  %v1585_v7 = vpack.c.bf16 %v799_v5, %v796_v63 }
 0x18c   : > { %1606 = vst [vmem:[%s2225_s19 + $0x78] sm:$0xff] %v1510_v2   ;;  %1622 = vst [vmem:[%s2225_s19 + $0xf8] sm:$0xff] %v1590_v3  }
 0x18d   : > { %1605 = vst [vmem:[%s2225_s19 + $0x70] sm:$0xff] %v1505_v6   ;;  %1621 = vst [vmem:[%s2225_s19 + $0xf0] sm:$0xff] %v1585_v7  }
 0x18e   : > { %1947 = shalt.err (!%p1944_p5)
}
 0x18f   : > { %s1948_s3 = scalar_lea.hbm %s2260_s5, 4096  ;;  %s1952_s8 = scalar_lea.hbm %s2317_s2, 8192 }
 0x190   : > { %p1949_p9 = scmp.ne.s32.totalorder %s2260_s5, %s1948_s3  ;;  %p1953_p3 = scmp.lt.u32.totalorder %s2260_s5, %s2317_s2 }
 0x191   : > { %p1954_p7 = scmp.lt.u32.totalorder %s1952_s8, %s1948_s3  ;;  %p1956_p4 = scmp.lt.u32.totalorder %s1948_s3, %s2260_s5 }
 0x192   : > { %p1950_p1 = pnand %p1949_p9, %p2143_p10 }
 0x193   : > { %p1955_p13 = por %p1954_p7, %p1953_p3 }
 0x194   : > { %p1951_p2 = pneg %p1950_p1 }
 0x195   : > { %p1957_p6 = por %p1956_p4, %p1955_p13 }
 0x197   : > { %p1958_p8 = pnand %p1957_p6, %p1951_p2 }
 0x199   : > { %1961 = shalt.err (!%p1958_p8)
}
 0x19a   : > { %s2027_s17 = smov 64   ;;  %s2028_s19 = smov 4  }
 0x19b   : > { %1765 = dma.vmem_to_hbm [thread:$0]  (%p2143_p10), %s2262_s6, 4096, %s2260_s5, %s1132_s12, %s2027_s17, %s2027_s17, %s2028_s19  }
 0x19c PF: > { %s1162_s21 = sand.u32 1, %s2000_s9   ;;  %p2335_p12 = scmp.ne.s32.totalorder %s2325_s20, 0 }
 0x19d   : > { %p2336_p11 = scmp.ge.s32.totalorder %s2020_s14, 2  ;;  %s1163_s7 = scalar_lea.sflag [#allocation4], %s1162_s21 }
 0x19f   : > { %p1776_p0 = pnand %p2336_p11, %p2335_p12 }
 0x1a1   : > { %1995 = dma.done.wait (!%p1776_p0), %s1163_s7, 4096  }
 0x1a2   : > { %1997 = vsyncadd (!%p1776_p0), %s1163_s7, 4294963200  ;;  %s19_s14 = sadd.s32 1, %s2020_s14   ;;  %s2337_s9 = smov %s2004_s10 }
 0x1a3   : > { %p16_p5 = scmp.ge.s32.totalorder %s19_s14, 4   ;;  %s2338_s10 = smov %s2008_s11 }
 0x1a4   : > { %s2339_s11 = smov %s2152_s28  ;;  %s2340_s12 = smov %s2016_s13 }
 0x1a5   : > { %s2341_s13 = smov %s2343_s25  ;;  %18 = sbr.rel (!%p16_p5) target bundleno = 7 (0x7), region = 79 }
 0x1ac   :  { %1168 = vsyncpa [#allocation3], 1 }
 0x1ad   :  { %1170 = vsyncpa [#allocation3 + $0x1], 1 }
 0x1ae   :  { %1171 = vsyncpa [#allocation6], 1 }
 0x1af   :  { %1173 = vsyncpa [#allocation6 + $0x1], 1 }
 0x1b0   :  { %1174 = vsyncpa [#allocation4], 1 }
 0x1b1   :  { %1176 = vsyncpa [#allocation4 + $0x1], 1 }

</bundles_post_ra>
